<compile_context>
chip_gen: v5e
topology: v5e:2x2
jax: 0.10.0
libtpu: 0.0.40
codegen_flags: <defaults>
</compile_context>

<pallas_src>
import math

import jax
import jax.numpy as jnp
from jax.experimental import pallas as pl
from jax.experimental.pallas import tpu as pltpu


EMB_DIM = 20
MAX_POSITIONS = 10000.0


def _round_up(n, m):
    return ((n + m - 1) // m) * m


def classic_embedding(t, embedding_dim=EMB_DIM, max_positions=MAX_POSITIONS):
    """JAX port of the PyTorch classic_embedding (used by the pure-JAX reference)."""
    timesteps = jnp.reshape(t, (-1,)).astype(jnp.float32) * 1000.0
    half_dim = embedding_dim // 2
    scale = math.log(max_positions) / (half_dim - 1)
    freqs = jnp.exp(jnp.arange(half_dim, dtype=jnp.float32) * -scale)
    emb = timesteps[:, None] * freqs[None, :]
    return jnp.concatenate([jnp.sin(emb), jnp.cos(emb)], axis=1)


def _make_kernel(rest_flags, fused):
    """Kernel: first FlexibleResidualBlock (split matmul over [x | sin | cos])
    -> remaining FlexibleResidualBlocks -> final bias-free Linear.

    Ref layout (inputs, then output):
      fused:   x, t, freqs, w0x, w0s, w0c, b0, [w_i, b_i]..., w_out, o
      unfused: x, sin_e, cos_e, w0x, w0s, w0c, b0, [w_i, b_i]..., w_out, o
    """

    def bdot(a, w_ref):
        # bf16 MXU operands, f32 accumulation.
        return jnp.dot(a.astype(jnp.bfloat16), w_ref[...],
                       preferred_element_type=jnp.float32)

    def kernel(*refs):
        if fused:
            x_ref, t_ref, freqs_ref = refs[0], refs[1], refs[2]
            # Time embedding computed in-kernel: (tile_b,1)*(1,half) broadcast,
            # sin/cos on EUP/VPU (idle otherwise) -> effectively free, and it
            # removes an HBM round-trip of the embedding.
            arg = (t_ref[...] * 1000.0) * freqs_ref[...]      # (tile_b, half) f32
            sin_e = jnp.sin(arg)
            cos_e = jnp.cos(arg)
        else:
            x_ref, sin_ref, cos_ref = refs[0], refs[1], refs[2]
            sin_e = sin_ref[...]
            cos_e = cos_ref[...]

        w0x_ref, w0s_ref, w0c_ref, b0_ref = refs[3], refs[4], refs[5], refs[6]
        rest = refs[7:]
        o_ref = rest[-1]
        w_out_ref = rest[-2]

        # First FlexibleResidualBlock (concat_size -> hidden[0]); the concat is
        # realized as a split matmul, so x_cat never exists as a tensor.
        z = (bdot(x_ref[...], w0x_ref)
             + bdot(sin_e, w0s_ref)
             + bdot(cos_e, w0c_ref)
             + b0_ref[...])
        h = jnp.maximum(z, 0.0)                               # ReLU, f32

        # Remaining FlexibleResidualBlocks.
        for i, is_res in enumerate(rest_flags):
            w_ref = rest[2 * i]
            b_ref = rest[2 * i + 1]
            z = jnp.maximum(bdot(h, w_ref) + b_ref[...], 0.0)
            h = h + z if is_res else z

        # Final bias-free Linear.
        o_ref[...] = bdot(h, w_out_ref)

    return kernel


def time_residual_mlp_forward(X, t, params, residual_flags, *,
                              tile_b_max=2048, fuse_embedding=True):
    """params = [(w0, b0), (w1, b1), ..., w_out] with wi: (in, out), bi: (1, out)."""
    if residual_flags and residual_flags[0]:
        # TODO(synk): first-block residual (hidden[0] == in_channels + EMB_DIM)
        # would require materializing x_cat inside the kernel; not needed for
        # the standard config (hidden[0] != 24).
        raise NotImplementedError("first-block residual not supported in fused kernel")

    B, in_ch = X.shape
    half = EMB_DIM // 2
    out_dim = params[-1].shape[1]

    Xf = X.astype(jnp.float32)
    tf = jnp.reshape(t, (-1, 1)).astype(jnp.float32)

    # Batch tiling: big tiles amortize the ~0.35us per-grid-step overhead,
    # always a multiple of 8 sublanes; pad the batch so the tile divides it.
    tile_b = min(int(tile_b_max), _round_up(max(B, 8), 8))
    padded_b = _round_up(B, tile_b)
    pad = padded_b - B
    if pad:
        Xf = jnp.pad(Xf, ((0, pad), (0, 0)))
        tf = jnp.pad(tf, ((0, pad), (0, 0)))

    # Weights shipped as bf16 (MXU operands); biases stay f32.
    w0, b0 = params[0]
    w0 = w0.astype(jnp.bfloat16)
    w0x = w0[:in_ch]
    w0s = w0[in_ch:in_ch + half]
    w0c = w0[in_ch + half:]
    rest_params = []
    for w, b in params[1:-1]:
        rest_params += [w.astype(jnp.bfloat16), b.astype(jnp.float32)]
    w_out = params[-1].astype(jnp.bfloat16)

    freqs = jnp.exp(
        jnp.arange(half, dtype=jnp.float32)
        * (-math.log(MAX_POSITIONS) / (half - 1))
    )[None, :]                                                 # (1, half) f32

    def row_spec(ncols):
        return pl.BlockSpec((tile_b, ncols), lambda i: (i, 0))

    def const_spec(shape):
        # Whole (tiny) array as one block, same block index every grid step ->
        # stays resident in VMEM across the pipeline (no re-DMA).
        nd = len(shape)
        return pl.BlockSpec(shape, lambda i, _n=nd: (0,) * _n)

    if fuse_embedding:
        lead_args = [Xf, tf, freqs]
        lead_specs = [row_spec(in_ch), row_spec(1), const_spec(freqs.shape)]
    else:
        arg = (tf * 1000.0) * freqs
        lead_args = [Xf, jnp.sin(arg), jnp.cos(arg)]
        lead_specs = [row_spec(in_ch), row_spec(half), row_spec(half)]

    weight_args = [w0x, w0s, w0c, b0] + rest_params + [w_out]
    weight_specs = [const_spec(a.shape) for a in weight_args]

    kernel = _make_kernel(list(residual_flags[1:]), fused=fuse_embedding)

    out = pl.pallas_call(
        kernel,
        grid=(padded_b // tile_b,),
        out_shape=jax.ShapeDtypeStruct((padded_b, out_dim), jnp.float32),
        in_specs=lead_specs + weight_specs,
        out_specs=row_spec(out_dim),
        compiler_params=pltpu.CompilerParams(
            dimension_semantics=("parallel",)),
    )(*lead_args, *weight_args)

    return out[:B]


def init_params(key, concat_size, hidden_channels, out_channels):
    """Deterministic init mimicking PyTorch Linear default (uniform +/- 1/sqrt(fan_in))."""
    params = []
    sizes = [concat_size] + list(hidden_channels)
    for i in range(len(hidden_channels)):
        fan_in, fan_out = sizes[i], sizes[i + 1]
        key, kw, kb = jax.random.split(key, 3)
        bound = 1.0 / math.sqrt(fan_in)
        w = jax.random.uniform(kw, (fan_in, fan_out), jnp.float32, -bound, bound)
        b = jax.random.uniform(kb, (1, fan_out), jnp.float32, -bound, bound)
        params.append((w, b))
    key, kw = jax.random.split(key)
    bound = 1.0 / math.sqrt(hidden_channels[-1])
    w_out = jax.random.uniform(kw, (hidden_channels[-1], out_channels),
                               jnp.float32, -bound, bound)
    params.append(w_out)
    residual_flags = [sizes[i] == sizes[i + 1] for i in range(len(hidden_channels))]
    return params, residual_flags


def reference_forward(X, t, params, residual_flags):
    """Pure-JAX f32 reference mirroring the PyTorch module."""
    t_emb = classic_embedding(t)
    h = jnp.concatenate([X.astype(jnp.float32), t_emb], axis=-1)
    for (w, b), is_res in zip(params[:-1], residual_flags):
        z = jnp.maximum(h @ w + b, 0.0)
        h = h + z if is_res else z
    return h @ params[-1]


def _run_kernel(X, t, params, residual_flags, **kw):
    try:
        return jax.block_until_ready(
            time_residual_mlp_forward(X, t, params, residual_flags,
                                      fuse_embedding=True, **kw))
    except Exception:
        # Fallback: compute sin/cos of the time embedding in XLA and ship them
        # to the kernel (only used if in-kernel trig lowering is unavailable).
        return jax.block_until_ready(
            time_residual_mlp_forward(X, t, params, residual_flags,
                                      fuse_embedding=False, **kw))


if __name__ == "__main__":
    batch = 8
    in_channels = 4
    hidden_channels = [32, 32]
    out_channels = 4
    concat_size = in_channels + EMB_DIM  # 24

    key = jax.random.PRNGKey(0)
    kx, kt, kp = jax.random.split(key, 3)
    X = jax.random.normal(kx, (batch, in_channels), jnp.float32)
    t = jax.random.uniform(kt, (batch, 1), jnp.float32)

    params, residual_flags = init_params(kp, concat_size, hidden_channels, out_channels)
    # residual_flags == [False, True]: 24->32 plain block, 32->32 residual block.

    out = _run_kernel(X, t, params, residual_flags)
    ref = reference_forward(X, t, params, residual_flags)
    assert out.shape == (batch, out_channels)
    # bf16 MXU operands (f32 accumulate) => relaxed tolerance vs the f32 reference.
    assert jnp.allclose(out, ref, atol=5e-2, rtol=5e-2), "Pallas kernel mismatch vs reference"

    # Second check: batch not a multiple of the tile + multi-step parallel grid
    # (tile_b_max=8 forces grid=(3,) with padding of the last tile).
    batch2 = 20
    X2 = jax.random.normal(jax.random.PRNGKey(1), (batch2, in_channels), jnp.float32)
    t2 = jax.random.uniform(jax.random.PRNGKey(2), (batch2, 1), jnp.float32)
    out2 = _run_kernel(X2, t2, params, residual_flags, tile_b_max=8)
    ref2 = reference_forward(X2, t2, params, residual_flags)
    assert out2.shape == (batch2, out_channels)
    assert jnp.allclose(out2, ref2, atol=5e-2, rtol=5e-2), "Pallas kernel mismatch (tiled grid)"

    # Third check: pipelined multi-tile grid at a realistic tile size
    # (batch 600 with tile_b=256 -> grid=(3,), last tile padded).
    batch3 = 600
    X3 = jax.random.normal(jax.random.PRNGKey(3), (batch3, in_channels), jnp.float32)
    t3 = jax.random.uniform(jax.random.PRNGKey(4), (batch3, 1), jnp.float32)
    out3 = _run_kernel(X3, t3, params, residual_flags, tile_b_max=256)
    ref3 = reference_forward(X3, t3, params, residual_flags)
    assert out3.shape == (batch3, out_channels)
    assert jnp.allclose(out3, ref3, atol=5e-2, rtol=5e-2), "Pallas kernel mismatch (pipelined grid)"

    print("KERNEL_OK")
</pallas_src>

<mosaic_0001>
module attributes {stable_mosaic.version = 11 : i64} {
  func.func @kernel(%arg0: i32, %arg1: memref<8x4xf32, #tpu.memory_space<vmem>>, %arg2: memref<8x1xf32, #tpu.memory_space<vmem>>, %arg3: memref<1x10xf32, #tpu.memory_space<vmem>>, %arg4: memref<4x32xbf16, #tpu.memory_space<vmem>>, %arg5: memref<10x32xbf16, #tpu.memory_space<vmem>>, %arg6: memref<10x32xbf16, #tpu.memory_space<vmem>>, %arg7: memref<1x32xf32, #tpu.memory_space<vmem>>, %arg8: memref<32x32xbf16, #tpu.memory_space<vmem>>, %arg9: memref<1x32xf32, #tpu.memory_space<vmem>>, %arg10: memref<32x4xbf16, #tpu.memory_space<vmem>>, %arg11: memref<8x4xf32, #tpu.memory_space<vmem>>) attributes {dimension_semantics = [#tpu.dimension_semantics<parallel>], iteration_bounds = array<i64: 1>, scalar_prefetch = 0 : i64, scratch_operands = 0 : i64, tpu.core_type = #tpu.core_type<tc>, window_params = [{transform_indices = @transform_0, window_bounds = array<i64: 8, 4>}, {transform_indices = @transform_1, window_bounds = array<i64: 8, 1>}, {pipeline_mode = #tpu.pipeline_mode<synchronous>, transform_indices = @transform_2, window_bounds = array<i64: 1, 10>}, {pipeline_mode = #tpu.pipeline_mode<synchronous>, transform_indices = @transform_3, window_bounds = array<i64: 4, 32>}, {pipeline_mode = #tpu.pipeline_mode<synchronous>, transform_indices = @transform_4, window_bounds = array<i64: 10, 32>}, {pipeline_mode = #tpu.pipeline_mode<synchronous>, transform_indices = @transform_5, window_bounds = array<i64: 10, 32>}, {pipeline_mode = #tpu.pipeline_mode<synchronous>, transform_indices = @transform_6, window_bounds = array<i64: 1, 32>}, {pipeline_mode = #tpu.pipeline_mode<synchronous>, transform_indices = @transform_7, window_bounds = array<i64: 32, 32>}, {pipeline_mode = #tpu.pipeline_mode<synchronous>, transform_indices = @transform_8, window_bounds = array<i64: 1, 32>}, {pipeline_mode = #tpu.pipeline_mode<synchronous>, transform_indices = @transform_9, window_bounds = array<i64: 32, 4>}, {transform_indices = @transform_10, window_bounds = array<i64: 8, 4>}]} {
    %c0 = arith.constant 0 : index
    %c0_0 = arith.constant 0 : index
    %0 = vector.load %arg2[%c0, %c0_0] : memref<8x1xf32, #tpu.memory_space<vmem>>, vector<8x1xf32>
    %cst = arith.constant 1.000000e+03 : f32
    %1 = vector.broadcast %cst : f32 to vector<8x1xf32>
    %2 = arith.mulf %0, %1 : vector<8x1xf32>
    %c0_1 = arith.constant 0 : index
    %c0_2 = arith.constant 0 : index
    %3 = vector.load %arg3[%c0_1, %c0_2] : memref<1x10xf32, #tpu.memory_space<vmem>>, vector<1x10xf32>
    %4 = vector.broadcast %2 : vector<8x1xf32> to vector<8x10xf32>
    %5 = vector.broadcast %3 : vector<1x10xf32> to vector<8x10xf32>
    %6 = arith.mulf %4, %5 : vector<8x10xf32>
    %7 = math.sin %6 : vector<8x10xf32>
    %8 = math.cos %6 : vector<8x10xf32>
    %c0_3 = arith.constant 0 : index
    %c0_4 = arith.constant 0 : index
    %9 = vector.load %arg1[%c0_3, %c0_4] : memref<8x4xf32, #tpu.memory_space<vmem>>, vector<8x4xf32>
    %10 = arith.truncf %9 : vector<8x4xf32> to vector<8x4xbf16>
    %c0_5 = arith.constant 0 : index
    %c0_6 = arith.constant 0 : index
    %11 = vector.load %arg4[%c0_5, %c0_6] : memref<4x32xbf16, #tpu.memory_space<vmem>>, vector<4x32xbf16>
    %cst_7 = arith.constant dense<0.000000e+00> : vector<8x32xf32>
    %12 = tpu.matmul %10, %11, %cst_7 {dimension_numbers = #tpu.dot_dimension_numbers<[1], [0], [0], [1], [0, 0, 1, 1], [], []>} : vector<8x4xbf16>, vector<4x32xbf16>, vector<8x32xf32> -> vector<8x32xf32>
    %13 = arith.truncf %7 : vector<8x10xf32> to vector<8x10xbf16>
    %c0_8 = arith.constant 0 : index
    %c0_9 = arith.constant 0 : index
    %14 = vector.load %arg5[%c0_8, %c0_9] : memref<10x32xbf16, #tpu.memory_space<vmem>>, vector<10x32xbf16>
    %cst_10 = arith.constant dense<0.000000e+00> : vector<8x32xf32>
    %15 = tpu.matmul %13, %14, %cst_10 {dimension_numbers = #tpu.dot_dimension_numbers<[1], [0], [0], [1], [0, 0, 1, 1], [], []>} : vector<8x10xbf16>, vector<10x32xbf16>, vector<8x32xf32> -> vector<8x32xf32>
    %16 = arith.addf %12, %15 : vector<8x32xf32>
    %17 = arith.truncf %8 : vector<8x10xf32> to vector<8x10xbf16>
    %c0_11 = arith.constant 0 : index
    %c0_12 = arith.constant 0 : index
    %18 = vector.load %arg6[%c0_11, %c0_12] : memref<10x32xbf16, #tpu.memory_space<vmem>>, vector<10x32xbf16>
    %cst_13 = arith.constant dense<0.000000e+00> : vector<8x32xf32>
    %19 = tpu.matmul %17, %18, %cst_13 {dimension_numbers = #tpu.dot_dimension_numbers<[1], [0], [0], [1], [0, 0, 1, 1], [], []>} : vector<8x10xbf16>, vector<10x32xbf16>, vector<8x32xf32> -> vector<8x32xf32>
    %20 = arith.addf %16, %19 : vector<8x32xf32>
    %c0_14 = arith.constant 0 : index
    %c0_15 = arith.constant 0 : index
    %21 = vector.load %arg7[%c0_14, %c0_15] : memref<1x32xf32, #tpu.memory_space<vmem>>, vector<1x32xf32>
    %22 = vector.broadcast %21 : vector<1x32xf32> to vector<8x32xf32>
    %23 = arith.addf %20, %22 : vector<8x32xf32>
    %cst_16 = arith.constant 0.000000e+00 : f32
    %24 = vector.broadcast %cst_16 : f32 to vector<8x32xf32>
    %25 = arith.maximumf %23, %24 : vector<8x32xf32>
    %26 = arith.truncf %25 : vector<8x32xf32> to vector<8x32xbf16>
    %c0_17 = arith.constant 0 : index
    %c0_18 = arith.constant 0 : index
    %27 = vector.load %arg8[%c0_17, %c0_18] : memref<32x32xbf16, #tpu.memory_space<vmem>>, vector<32x32xbf16>
    %cst_19 = arith.constant dense<0.000000e+00> : vector<8x32xf32>
    %28 = tpu.matmul %26, %27, %cst_19 {dimension_numbers = #tpu.dot_dimension_numbers<[1], [0], [0], [1], [0, 0, 1, 1], [], []>} : vector<8x32xbf16>, vector<32x32xbf16>, vector<8x32xf32> -> vector<8x32xf32>
    %c0_20 = arith.constant 0 : index
    %c0_21 = arith.constant 0 : index
    %29 = vector.load %arg9[%c0_20, %c0_21] : memref<1x32xf32, #tpu.memory_space<vmem>>, vector<1x32xf32>
    %30 = vector.broadcast %29 : vector<1x32xf32> to vector<8x32xf32>
    %31 = arith.addf %28, %30 : vector<8x32xf32>
    %cst_22 = arith.constant 0.000000e+00 : f32
    %32 = vector.broadcast %cst_22 : f32 to vector<8x32xf32>
    %33 = arith.maximumf %31, %32 : vector<8x32xf32>
    %34 = arith.addf %25, %33 : vector<8x32xf32>
    %35 = arith.truncf %34 : vector<8x32xf32> to vector<8x32xbf16>
    %c0_23 = arith.constant 0 : index
    %c0_24 = arith.constant 0 : index
    %36 = vector.load %arg10[%c0_23, %c0_24] : memref<32x4xbf16, #tpu.memory_space<vmem>>, vector<32x4xbf16>
    %cst_25 = arith.constant dense<0.000000e+00> : vector<8x4xf32>
    %37 = tpu.matmul %35, %36, %cst_25 {dimension_numbers = #tpu.dot_dimension_numbers<[1], [0], [0], [1], [0, 0, 1, 1], [], []>} : vector<8x32xbf16>, vector<32x4xbf16>, vector<8x4xf32> -> vector<8x4xf32>
    %c0_26 = arith.constant 0 : index
    %c0_27 = arith.constant 0 : index
    %38 = vector.load %arg11[%c0_26, %c0_27] : memref<8x4xf32, #tpu.memory_space<vmem>>, vector<8x4xf32>
    tpu.vector_store %arg11[%c0_26, %c0_27], %37 {strides = array<i32>} : memref<8x4xf32, #tpu.memory_space<vmem>>, vector<8x4xf32>,
    return
  }
  func.func @transform_0(%arg0: i32) -> (i32, i32) {
    %c0_i32 = arith.constant 0 : i32
    %c0_i32_0 = arith.constant 0 : i32
    return %arg0, %c0_i32 : i32, i32
  }
  func.func @transform_1(%arg0: i32) -> (i32, i32) {
    %c0_i32 = arith.constant 0 : i32
    %c0_i32_0 = arith.constant 0 : i32
    return %arg0, %c0_i32 : i32, i32
  }
  func.func @transform_2(%arg0: i32) -> (i32, i32) {
    %c0_i32 = arith.constant 0 : i32
    %c0_i32_0 = arith.constant 0 : i32
    %c0_i32_1 = arith.constant 0 : i32
    return %c0_i32, %c0_i32_0 : i32, i32
  }
  func.func @transform_3(%arg0: i32) -> (i32, i32) {
    %c0_i32 = arith.constant 0 : i32
    %c0_i32_0 = arith.constant 0 : i32
    %c0_i32_1 = arith.constant 0 : i32
    return %c0_i32, %c0_i32_0 : i32, i32
  }
  func.func @transform_4(%arg0: i32) -> (i32, i32) {
    %c0_i32 = arith.constant 0 : i32
    %c0_i32_0 = arith.constant 0 : i32
    %c0_i32_1 = arith.constant 0 : i32
    return %c0_i32, %c0_i32_0 : i32, i32
  }
  func.func @transform_5(%arg0: i32) -> (i32, i32) {
    %c0_i32 = arith.constant 0 : i32
    %c0_i32_0 = arith.constant 0 : i32
    %c0_i32_1 = arith.constant 0 : i32
    return %c0_i32, %c0_i32_0 : i32, i32
  }
  func.func @transform_6(%arg0: i32) -> (i32, i32) {
    %c0_i32 = arith.constant 0 : i32
    %c0_i32_0 = arith.constant 0 : i32
    %c0_i32_1 = arith.constant 0 : i32
    return %c0_i32, %c0_i32_0 : i32, i32
  }
  func.func @transform_7(%arg0: i32) -> (i32, i32) {
    %c0_i32 = arith.constant 0 : i32
    %c0_i32_0 = arith.constant 0 : i32
    %c0_i32_1 = arith.constant 0 : i32
    return %c0_i32, %c0_i32_0 : i32, i32
  }
  func.func @transform_8(%arg0: i32) -> (i32, i32) {
    %c0_i32 = arith.constant 0 : i32
    %c0_i32_0 = arith.constant 0 : i32
    %c0_i32_1 = arith.constant 0 : i32
    return %c0_i32, %c0_i32_0 : i32, i32
  }
  func.func @transform_9(%arg0: i32) -> (i32, i32) {
    %c0_i32 = arith.constant 0 : i32
    %c0_i32_0 = arith.constant 0 : i32
    %c0_i32_1 = arith.constant 0 : i32
    return %c0_i32, %c0_i32_0 : i32, i32
  }
  func.func @transform_10(%arg0: i32) -> (i32, i32) {
    %c0_i32 = arith.constant 0 : i32
    %c0_i32_0 = arith.constant 0 : i32
    return %arg0, %c0_i32 : i32, i32
  }
}

module attributes {stable_mosaic.version = 11 : i64} {
  func.func @kernel(%arg0: i32, %arg1: memref<8x4xf32, #tpu.memory_space<vmem>>, %arg2: memref<8x10xf32, #tpu.memory_space<vmem>>, %arg3: memref<8x10xf32, #tpu.memory_space<vmem>>, %arg4: memref<4x32xbf16, #tpu.memory_space<vmem>>, %arg5: memref<10x32xbf16, #tpu.memory_space<vmem>>, %arg6: memref<10x32xbf16, #tpu.memory_space<vmem>>, %arg7: memref<1x32xf32, #tpu.memory_space<vmem>>, %arg8: memref<32x32xbf16, #tpu.memory_space<vmem>>, %arg9: memref<1x32xf32, #tpu.memory_space<vmem>>, %arg10: memref<32x4xbf16, #tpu.memory_space<vmem>>, %arg11: memref<8x4xf32, #tpu.memory_space<vmem>>) attributes {dimension_semantics = [#tpu.dimension_semantics<parallel>], iteration_bounds = array<i64: 1>, scalar_prefetch = 0 : i64, scratch_operands = 0 : i64, tpu.core_type = #tpu.core_type<tc>, window_params = [{transform_indices = @transform_0, window_bounds = array<i64: 8, 4>}, {transform_indices = @transform_1, window_bounds = array<i64: 8, 10>}, {transform_indices = @transform_2, window_bounds = array<i64: 8, 10>}, {pipeline_mode = #tpu.pipeline_mode<synchronous>, transform_indices = @transform_3, window_bounds = array<i64: 4, 32>}, {pipeline_mode = #tpu.pipeline_mode<synchronous>, transform_indices = @transform_4, window_bounds = array<i64: 10, 32>}, {pipeline_mode = #tpu.pipeline_mode<synchronous>, transform_indices = @transform_5, window_bounds = array<i64: 10, 32>}, {pipeline_mode = #tpu.pipeline_mode<synchronous>, transform_indices = @transform_6, window_bounds = array<i64: 1, 32>}, {pipeline_mode = #tpu.pipeline_mode<synchronous>, transform_indices = @transform_7, window_bounds = array<i64: 32, 32>}, {pipeline_mode = #tpu.pipeline_mode<synchronous>, transform_indices = @transform_8, window_bounds = array<i64: 1, 32>}, {pipeline_mode = #tpu.pipeline_mode<synchronous>, transform_indices = @transform_9, window_bounds = array<i64: 32, 4>}, {transform_indices = @transform_10, window_bounds = array<i64: 8, 4>}]} {
    %c0 = arith.constant 0 : index
    %c0_0 = arith.constant 0 : index
    %0 = vector.load %arg2[%c0, %c0_0] : memref<8x10xf32, #tpu.memory_space<vmem>>, vector<8x10xf32>
    %c0_1 = arith.constant 0 : index
    %c0_2 = arith.constant 0 : index
    %1 = vector.load %arg3[%c0_1, %c0_2] : memref<8x10xf32, #tpu.memory_space<vmem>>, vector<8x10xf32>
    %c0_3 = arith.constant 0 : index
    %c0_4 = arith.constant 0 : index
    %2 = vector.load %arg1[%c0_3, %c0_4] : memref<8x4xf32, #tpu.memory_space<vmem>>, vector<8x4xf32>
    %3 = arith.truncf %2 : vector<8x4xf32> to vector<8x4xbf16>
    %c0_5 = arith.constant 0 : index
    %c0_6 = arith.constant 0 : index
    %4 = vector.load %arg4[%c0_5, %c0_6] : memref<4x32xbf16, #tpu.memory_space<vmem>>, vector<4x32xbf16>
    %cst = arith.constant dense<0.000000e+00> : vector<8x32xf32>
    %5 = tpu.matmul %3, %4, %cst {dimension_numbers = #tpu.dot_dimension_numbers<[1], [0], [0], [1], [0, 0, 1, 1], [], []>} : vector<8x4xbf16>, vector<4x32xbf16>, vector<8x32xf32> -> vector<8x32xf32>
    %6 = arith.truncf %0 : vector<8x10xf32> to vector<8x10xbf16>
    %c0_7 = arith.constant 0 : index
    %c0_8 = arith.constant 0 : index
    %7 = vector.load %arg5[%c0_7, %c0_8] : memref<10x32xbf16, #tpu.memory_space<vmem>>, vector<10x32xbf16>
    %cst_9 = arith.constant dense<0.000000e+00> : vector<8x32xf32>
    %8 = tpu.matmul %6, %7, %cst_9 {dimension_numbers = #tpu.dot_dimension_numbers<[1], [0], [0], [1], [0, 0, 1, 1], [], []>} : vector<8x10xbf16>, vector<10x32xbf16>, vector<8x32xf32> -> vector<8x32xf32>
    %9 = arith.addf %5, %8 : vector<8x32xf32>
    %10 = arith.truncf %1 : vector<8x10xf32> to vector<8x10xbf16>
    %c0_10 = arith.constant 0 : index
    %c0_11 = arith.constant 0 : index
    %11 = vector.load %arg6[%c0_10, %c0_11] : memref<10x32xbf16, #tpu.memory_space<vmem>>, vector<10x32xbf16>
    %cst_12 = arith.constant dense<0.000000e+00> : vector<8x32xf32>
    %12 = tpu.matmul %10, %11, %cst_12 {dimension_numbers = #tpu.dot_dimension_numbers<[1], [0], [0], [1], [0, 0, 1, 1], [], []>} : vector<8x10xbf16>, vector<10x32xbf16>, vector<8x32xf32> -> vector<8x32xf32>
    %13 = arith.addf %9, %12 : vector<8x32xf32>
    %c0_13 = arith.constant 0 : index
    %c0_14 = arith.constant 0 : index
    %14 = vector.load %arg7[%c0_13, %c0_14] : memref<1x32xf32, #tpu.memory_space<vmem>>, vector<1x32xf32>
    %15 = vector.broadcast %14 : vector<1x32xf32> to vector<8x32xf32>
    %16 = arith.addf %13, %15 : vector<8x32xf32>
    %cst_15 = arith.constant 0.000000e+00 : f32
    %17 = vector.broadcast %cst_15 : f32 to vector<8x32xf32>
    %18 = arith.maximumf %16, %17 : vector<8x32xf32>
    %19 = arith.truncf %18 : vector<8x32xf32> to vector<8x32xbf16>
    %c0_16 = arith.constant 0 : index
    %c0_17 = arith.constant 0 : index
    %20 = vector.load %arg8[%c0_16, %c0_17] : memref<32x32xbf16, #tpu.memory_space<vmem>>, vector<32x32xbf16>
    %cst_18 = arith.constant dense<0.000000e+00> : vector<8x32xf32>
    %21 = tpu.matmul %19, %20, %cst_18 {dimension_numbers = #tpu.dot_dimension_numbers<[1], [0], [0], [1], [0, 0, 1, 1], [], []>} : vector<8x32xbf16>, vector<32x32xbf16>, vector<8x32xf32> -> vector<8x32xf32>
    %c0_19 = arith.constant 0 : index
    %c0_20 = arith.constant 0 : index
    %22 = vector.load %arg9[%c0_19, %c0_20] : memref<1x32xf32, #tpu.memory_space<vmem>>, vector<1x32xf32>
    %23 = vector.broadcast %22 : vector<1x32xf32> to vector<8x32xf32>
    %24 = arith.addf %21, %23 : vector<8x32xf32>
    %cst_21 = arith.constant 0.000000e+00 : f32
    %25 = vector.broadcast %cst_21 : f32 to vector<8x32xf32>
    %26 = arith.maximumf %24, %25 : vector<8x32xf32>
    %27 = arith.addf %18, %26 : vector<8x32xf32>
    %28 = arith.truncf %27 : vector<8x32xf32> to vector<8x32xbf16>
    %c0_22 = arith.constant 0 : index
    %c0_23 = arith.constant 0 : index
    %29 = vector.load %arg10[%c0_22, %c0_23] : memref<32x4xbf16, #tpu.memory_space<vmem>>, vector<32x4xbf16>
    %cst_24 = arith.constant dense<0.000000e+00> : vector<8x4xf32>
    %30 = tpu.matmul %28, %29, %cst_24 {dimension_numbers = #tpu.dot_dimension_numbers<[1], [0], [0], [1], [0, 0, 1, 1], [], []>} : vector<8x32xbf16>, vector<32x4xbf16>, vector<8x4xf32> -> vector<8x4xf32>
    %c0_25 = arith.constant 0 : index
    %c0_26 = arith.constant 0 : index
    %31 = vector.load %arg11[%c0_25, %c0_26] : memref<8x4xf32, #tpu.memory_space<vmem>>, vector<8x4xf32>
    tpu.vector_store %arg11[%c0_25, %c0_26], %30 {strides = array<i32>} : memref<8x4xf32, #tpu.memory_space<vmem>>, vector<8x4xf32>,
    return
  }
  func.func @transform_0(%arg0: i32) -> (i32, i32) {
    %c0_i32 = arith.constant 0 : i32
    %c0_i32_0 = arith.constant 0 : i32
    return %arg0, %c0_i32 : i32, i32
  }
  func.func @transform_1(%arg0: i32) -> (i32, i32) {
    %c0_i32 = arith.constant 0 : i32
    %c0_i32_0 = arith.constant 0 : i32
    return %arg0, %c0_i32 : i32, i32
  }
  func.func @transform_2(%arg0: i32) -> (i32, i32) {
    %c0_i32 = arith.constant 0 : i32
    %c0_i32_0 = arith.constant 0 : i32
    return %arg0, %c0_i32 : i32, i32
  }
  func.func @transform_3(%arg0: i32) -> (i32, i32) {
    %c0_i32 = arith.constant 0 : i32
    %c0_i32_0 = arith.constant 0 : i32
    %c0_i32_1 = arith.constant 0 : i32
    return %c0_i32, %c0_i32_0 : i32, i32
  }
  func.func @transform_4(%arg0: i32) -> (i32, i32) {
    %c0_i32 = arith.constant 0 : i32
    %c0_i32_0 = arith.constant 0 : i32
    %c0_i32_1 = arith.constant 0 : i32
    return %c0_i32, %c0_i32_0 : i32, i32
  }
  func.func @transform_5(%arg0: i32) -> (i32, i32) {
    %c0_i32 = arith.constant 0 : i32
    %c0_i32_0 = arith.constant 0 : i32
    %c0_i32_1 = arith.constant 0 : i32
    return %c0_i32, %c0_i32_0 : i32, i32
  }
  func.func @transform_6(%arg0: i32) -> (i32, i32) {
    %c0_i32 = arith.constant 0 : i32
    %c0_i32_0 = arith.constant 0 : i32
    %c0_i32_1 = arith.constant 0 : i32
    return %c0_i32, %c0_i32_0 : i32, i32
  }
  func.func @transform_7(%arg0: i32) -> (i32, i32) {
    %c0_i32 = arith.constant 0 : i32
    %c0_i32_0 = arith.constant 0 : i32
    %c0_i32_1 = arith.constant 0 : i32
    return %c0_i32, %c0_i32_0 : i32, i32
  }
  func.func @transform_8(%arg0: i32) -> (i32, i32) {
    %c0_i32 = arith.constant 0 : i32
    %c0_i32_0 = arith.constant 0 : i32
    %c0_i32_1 = arith.constant 0 : i32
    return %c0_i32, %c0_i32_0 : i32, i32
  }
  func.func @transform_9(%arg0: i32) -> (i32, i32) {
    %c0_i32 = arith.constant 0 : i32
    %c0_i32_0 = arith.constant 0 : i32
    %c0_i32_1 = arith.constant 0 : i32
    return %c0_i32, %c0_i32_0 : i32, i32
  }
  func.func @transform_10(%arg0: i32) -> (i32, i32) {
    %c0_i32 = arith.constant 0 : i32
    %c0_i32_0 = arith.constant 0 : i32
    return %arg0, %c0_i32 : i32, i32
  }
}

</mosaic_0001>

<bundles_post_ra>
// kernel: tpu_custom_call.1
= control target key start
LH: loop header
LB: loop body
LE: loop exit
PB: predicated region body
PF: predicated region fallthrough
CT: control target
= control target key end

     0   :  { %v574_v0 = vmov 0   ;;  %vm393_vm0 = vcmask 1041408   ;;  %vm389_vm1 = vcmask 31744   ;;  %vm372_vm2 = vcmask 1044480   ;;  %s744_s1 = inlined_call_operand.vmem [shape: f32[8,1], index: 1, kind: input, shape index: {}]   ;;  %s745_s2 = inlined_call_operand.vmem [shape: f32[1,10], index: 2, kind: input, shape index: {}]   ;;  %s746_s3 = inlined_call_operand.vmem [shape: bf16[4,32], index: 3, kind: input, shape index: {}]   ;;  %s747_s0 = inlined_call_operand.vmem [shape: f32[8,4], index: 0, kind: input, shape index: {}]   ;;  %s748_s4 = inlined_call_operand.vmem [shape: bf16[10,32], index: 4, kind: input, shape index: {}]   ;;  %s749_s5 = inlined_call_operand.vmem [shape: bf16[10,32], index: 5, kind: input, shape index: {}]   ;;  %s750_s6 = inlined_call_operand.vmem [shape: f32[1,32], index: 6, kind: input, shape index: {}]   ;;  %s751_s8 = inlined_call_operand.vmem [shape: f32[1,32], index: 8, kind: input, shape index: {}]   ;;  %s752_s7 = inlined_call_operand.vmem [shape: bf16[32,32], index: 7, kind: input, shape index: {}]   ;;  %s753_s9 = inlined_call_operand.vmem [shape: bf16[32,4], index: 9, kind: input, shape index: {}]   ;;  %s754_s10 = inlined_call_operand.vmem [shape: f32[8,4], index: 10, kind: output, shape index: {}]  }
   0x1   :  { %570 = vset.pattern.permute.xlu0 %v574_v0  ;;  %v36_v1 = vld [vmem:[%s744_s1] sm:$0xff]  ;;  %v575_v29 = vmov 683565275   ;;  %v576_v31 = vmov 2475754826  }
   0x2   :  { %v37_v2 = vmul.f32 1000.0, %v36_v1  ;;  %v571_v3 = vld [vmem:[%s745_s2] ss:$0 sm:$0xff]  ;;  %v557_v12 = vld [vmem:[%s748_s4] sm:$0x10] }
   0x3   :  { %v359_v6 = vld [vmem:[%s746_s3] sm:$0x3]  ;;  %v558_v16 = vld [vmem:[%s749_s5] sm:$0x10]  ;;  %v577_v34 = vmov 2131351028  }
   0x4   :  { %41 = vperm.xlu0 %570, %v37_v2   ;;  %v357_v7 = vld [vmem:[%s747_s0] sm:$0xff]  ;;  %v395_v9 = vsel %vm393_vm0, %v359_v6, 0  ;;  %v578_v37 = vmov 2102212464   ;;  %v579_v40 = vmov 920167782  }
   0x5   :  { %404 = vmatpush.bf16.msra.mxu1 %v395_v9  ;;  %v358_v10 = vpack.c.bf16 %v357_v7, %v357_v7  ;;  %v530_v11 = vld [vmem:[%s748_s4] sm:$0xf]  ;;  %v580_v43 = vmov 1326507024  }
   0x6   :  { %v536_v13 = vld [vmem:[%s749_s5] sm:$0xf]  ;;  %v531_v15 = vor.u32 %v557_v12, %v530_v11 }
   0x7   :  { %v537_v17 = vor.u32 %v558_v16, %v536_v13 }
   0x8   :  { %533 = vmatmul.msk.bf16.vlgmr.msra.gmra.mxu1 %vm389_vm1, %v358_v10  ;;  %v374_v19 = vsel %vm372_vm2, %v531_v15, 0 }
   0x9   :  { %383 = vmatpush.bf16.msra.mxu0 %v374_v19  ;;  %v422_v21 = vsel %vm372_vm2, %v537_v17, 0 }
   0xa   :  { %431 = vmatpush.bf16.msra.mxu2 %v422_v21 }
  0x76   :  { %v42_v4 = vpop.permute.xlu0 %41 }
  0x77   :  { %v643_v5 = vmul.f32 %v571_v3, %v42_v4 }
  0x79   :  { %v51_v8 = vand.u32 2139095040, %v643_v5  ;;  %v48_v20 = vand.u32 2147483647, %v643_v5  ;;  %vm50_vm15 = vcmp.lt.s32.totalorder %v643_v5, 0 }
  0x7b   :  { %v52_v14 = vshrl.u32 %v51_v8, 23  ;;  %v55_v23 = vand.u32 8388607, %v48_v20  ;;  %vm49_vm0 = vcmp.le.f32.partialorder %v48_v20, 0.7853982 }
  0x7d   :  { %v522_v18 = vadd.s32 4294967169, %v52_v14  ;;  %v56_v27 = vor.u32 8388608, %v55_v23 }
  0x7f   :  { %v58_v22 = vadd.s32 1, %v522_v18  ;;  %v679_v50 = vshll.u32 %v56_v27, 8 }
  0x81   :  { %vm59_vm3 = vcmp.gt.s32.totalorder %v58_v22, 0  ;;  %v97_v59 = vand.u32 65535, %v679_v50  ;;  %v98_v60 = vshrl.u32 %v679_v50, 16 }
  0x82   :  { %v60_v24 = vsel %vm59_vm3, %v58_v22, 0 }
  0x83   :  { %v62_v25 = vand.u32 31, %v60_v24  ;;  %v670_v28 = vshrl.u32 %v60_v24, 5 }
  0x85   :  { %v668_v26 = vsub.s32 32, %v62_v25  ;;  %v65_v30 = vshll.u32 %v575_v29, %v62_v25  ;;  %v68_v32 = vshll.u32 %v576_v31, %v62_v25  ;;  %v71_v36 = vshll.u32 %v577_v34, %v62_v25 }
  0x86   :  { %v74_v39 = vshll.u32 %v578_v37, %v62_v25  ;;  %v77_v42 = vshll.u32 %v579_v40, %v62_v25  ;;  %vm80_vm4 = vcmp.lt.s32.totalorder %v670_v28, 1  ;;  %vm83_vm5 = vcmp.lt.s32.totalorder %v670_v28, 4 }
  0x87   :  { %v66_v33 = vshrl.u32 %v576_v31, %v668_v26  ;;  %v69_v35 = vshrl.u32 %v577_v34, %v668_v26  ;;  %v72_v38 = vshrl.u32 %v578_v37, %v668_v26  ;;  %v75_v41 = vshrl.u32 %v579_v40, %v668_v26 }
  0x88   :  { %v78_v44 = vshrl.u32 %v580_v43, %v668_v26  ;;  %vm82_vm6 = vcmp.lt.s32.totalorder %v670_v28, 3  ;;  %vm81_vm7 = vcmp.lt.s32.totalorder %v670_v28, 2  ;;  %v64_v24 = vshrl.u32 %v575_v29, %v668_v26 }
  0x89   :  { %v67_v45 = vor.u32 %v66_v33, %v65_v30  ;;  %v70_v46 = vor.u32 %v69_v35, %v68_v32  ;;  %v73_v47 = vor.u32 %v72_v38, %v71_v36  ;;  %v76_v48 = vor.u32 %v75_v41, %v74_v39 }
  0x8a   :  { %v79_v49 = vor.u32 %v78_v44, %v77_v42 }
  0x8b   :  { %v88_v51 = vsel %vm80_vm4, %v67_v45, %v70_v46  ;;  %v92_v52 = vsel %vm80_vm4, %v70_v46, %v73_v47  ;;  %v89_v53 = vsel %vm83_vm5, %v76_v48, 920167782  ;;  %v85_v21 = vsel %vm83_vm5, %v73_v47, 2102212464 }
  0x8c   :  { %v93_v54 = vsel %vm83_vm5, %v79_v49, 1326507024  ;;  %v90_v55 = vsel %vm82_vm6, %v73_v47, %v89_v53  ;;  %v84_v33 = vsel %vm80_vm4, %v64_v24, %v67_v45  ;;  %v86_v34 = vsel %vm82_vm6, %v70_v46, %v85_v21 }
  0x8d   :  { %v94_v56 = vsel %vm82_vm6, %v76_v48, %v93_v54  ;;  %v91_v57 = vsel %vm81_vm7, %v88_v51, %v90_v55  ;;  %v87_v26 = vsel %vm81_vm7, %v84_v33, %v86_v34 }
  0x8e   :  { %v95_v58 = vsel %vm81_vm7, %v92_v52, %v94_v56  ;;  %v121_v63 = vand.u32 65535, %v91_v57  ;;  %v122_v1 = vshrl.u32 %v91_v57, 16  ;;  %v141_v41 = vmul.u32 %v679_v50, %v87_v26 }
  0x8f   :  { %v99_v61 = vand.u32 65535, %v95_v58  ;;  %v100_v62 = vshrl.u32 %v95_v58, 16 }
  0x90   :  { %v124_v4 = vmul.u32 %v122_v1, %v97_v59  ;;  %v125_v6 = vmul.u32 %v121_v63, %v98_v60  ;;  %v123_v10 = vmul.u32 %v121_v63, %v97_v59  ;;  %v126_v14 = vmul.u32 %v122_v1, %v98_v60 }
  0x91   :  { %v102_v2 = vmul.u32 %v100_v62, %v97_v59  ;;  %v103_v3 = vmul.u32 %v99_v61, %v98_v60  ;;  %v101_v7 = vmul.u32 %v99_v61, %v97_v59  ;;  %v104_v9 = vmul.u32 %v100_v62, %v98_v60 }
  0x92   :  { %v127_v11 = vshll.u32 %v124_v4, 16  ;;  %v129_v16 = vshll.u32 %v125_v6, 16  ;;  %v128_v31 = vshrl.u32 %v124_v4, 16  ;;  %v130_v37 = vshrl.u32 %v125_v6, 16 }
  0x93   :  { %v105_v8 = vshll.u32 %v102_v2, 16  ;;  %v107_v12 = vshll.u32 %v103_v3, 16  ;;  %v106_v25 = vshrl.u32 %v102_v2, 16  ;;  %v108_v35 = vshrl.u32 %v103_v3, 16 }
  0x94   :  { %vm131_vm9 = vc.u32 %v123_v10, %v127_v11  ;;  %v133_v17 = vadd.s32 %v127_v11, %v123_v10 }
  0x95   :  { %vm109_vm8 = vc.u32 %v101_v7, %v105_v8  ;;  %v111_v13 = vadd.s32 %v105_v8, %v101_v7  ;;  %v132_v19 = vsel %vm131_vm9, 1, %v574_v0  ;;  %vm368_vm9 = vcmask 80896  }
  0x96   :  { %v110_v15 = vsel %vm109_vm8, 1, %v574_v0  ;;  %v134_v22 = vadd.s32 %v132_v19, %v126_v14  ;;  %vm135_vm11 = vc.u32 %v133_v17, %v129_v16  ;;  %v137_v40 = vadd.s32 %v133_v17, %v129_v16 }
  0x97   :  { %v112_v18 = vadd.s32 %v110_v15, %v104_v9  ;;  %vm113_vm10 = vc.u32 %v111_v13, %v107_v12  ;;  %v136_v30 = vsel %vm135_vm11, 1, %v574_v0  ;;  %vm191_vm8 = vweird.f32 %v643_v5 }
  0x98   :  { %v114_v23 = vsel %vm113_vm10, 1, %v574_v0  ;;  %v138_v32 = vadd.s32 %v136_v30, %v134_v22  ;;  %vm465_vm10 = vcmask 261120  }
  0x99   :  { %v116_v27 = vadd.s32 %v114_v23, %v112_v18 }
  0x9a   :  { %v139_v38 = vadd.s32 %v138_v32, %v128_v31 }
  0x9b   :  { %v117_v36 = vadd.s32 %v116_v27, %v106_v25 }
  0x9c   :  { %v140_v29 = vadd.s32 %v139_v38, %v130_v37 }
  0x9d   :  { %v118_v39 = vadd.s32 %v117_v36, %v108_v35 }
  0x9e   :  { %v144_v0 = vadd.s32 1, %v140_v29 }
  0x9f   :  { %vm143_vm12 = vc.u32 %v118_v39, %v137_v40  ;;  %v142_v28 = vadd.s32 %v137_v40, %v118_v39  ;;  %v406_v40 = vpop.f32.mrf.mxu1 }
  0xa0   :  { %v145_v42 = vsel %vm143_vm12, %v144_v0, %v140_v29  ;;  %v560_v29 = vld [vmem:[%s752_s7 + $0x8] sm:$0xff] }
  0xa1   :  { %v146_v43 = vadd.s32 %v145_v42, %v141_v41  ;;  %475 = vmatpush.bf16.msra.mxu3 %v560_v29  ;;  %v562_v0 = vld [vmem:[%s753_s9 + $0x8] sm:$0xff] }
  0xa2   :  { %510 = vmatpush.bf16.msrb.mxu0 %v562_v0 }
  0xa3   :  { %v147_v44 = vadd.s32 536870912, %v146_v43 }
  0xa5   :  { %v148_v45 = vshrl.u32 %v147_v44, 30 }
  0xa7   :  { %v149_v47 = vshll.u32 %v148_v45, 30  ;;  %v172_v3 = vsub.s32 4, %v148_v45  ;;  %v408_v26 = vpop.f32.mrf.mxu1 }
  0xa9   :  { %v150_v46 = vsub.s32 %v146_v43, %v149_v47  ;;  %v173_v9 = vsel %vm50_vm15, %v172_v3, %v148_v45  ;;  %v572_v43 = vld [vmem:[%s750_s6] ss:$0 sm:$0xff] }
  0xaa   :  { %v175_v12 = vsel %vm49_vm0, 0, %v173_v9 }
  0xab   :  { %vm151_vm13 = vcmp.lt.s32.totalorder %v150_v46, 0  ;;  %v152_v48 = vsub.s32 0, %v150_v46  ;;  %v192_v17 = vadd.s32 3, %v175_v12  ;;  %v347_v22 = vand.u32 3, %v175_v12 }
  0xad   :  { %v153_v49 = vsel %vm151_vm13, %v152_v48, %v150_v46  ;;  %v193_v23 = vand.u32 3, %v192_v17  ;;  %vm348_vm2 = vcmp.lt.s32.totalorder %v347_v22, 2  ;;  %vm349_vm3 = vcmp.eq.s32.totalorder %v347_v22, 0 }
  0xae   :  { %v154_v51 = vclz %v153_v49  ;;  %vm352_vm7 = vcmp.eq.s32.totalorder %v347_v22, 2 }
  0xaf   :  { %vm194_vm4 = vcmp.lt.s32.totalorder %v193_v23, 2  ;;  %vm195_vm5 = vcmp.eq.s32.totalorder %v193_v23, 0  ;;  %vm198_vm6 = vcmp.eq.s32.totalorder %v193_v23, 2 }
  0xb0   :  { %v523_v52 = vadd.s32 4294967294, %v154_v51 }
  0xb2   :  { %vm524_vm14 = vcmp.lt.s32.totalorder %v523_v52, 0 }
  0xb3   :  { %v157_v53 = vsel %vm524_vm14, 0, %v523_v52  ;;  %v561_v52 = vld [vmem:[%s753_s9] sm:$0xff] }
  0xb4   :  { %v158_v54 = vsub.s32 32, %v157_v53  ;;  %v162_v55 = vsub.s32 4294967266, %v157_v53  ;;  %v159_v56 = vshll.u32 %v150_v46, %v157_v53  ;;  %511 = vmatpush.bf16.msrb.mxu0 %v561_v52  ;;  %v573_v53 = vld [vmem:[%s751_s8] ss:$0 sm:$0xff] }
  0xb6   :  { %v160_v57 = vshrl.u32 %v142_v28, %v158_v54  ;;  %v163_v58 = vadd.s32 127, %v162_v55 }
  0xb8   :  { %v161_v50 = vor.u32 %v160_v57, %v159_v56  ;;  %v164_v59 = vshll.u32 %v163_v58, 23 }
  0xba   :  { %v165_v60 = vor.u32 4788187, %v164_v59  ;;  %v168_v62 = vcvt.s32.f32 %v161_v50 }
  0xbc   :  { %v166_v61 = vand.u32 2147483647, %v165_v60 }
  0xbe   :  { %v169_v63 = vmul.f32 %v168_v62, %v166_v61 }
  0xc0   :  { %v170_v1 = vxor.u32 2147483648, %v169_v63 }
  0xc2   :  { %v171_v2 = vsel %vm50_vm15, %v170_v1, %v169_v63 }
  0xc3   :  { %v174_v4 = vsel %vm49_vm0, %v643_v5, %v171_v2  ;;  %v559_v5 = vld [vmem:[%s752_s7] sm:$0xff] }
  0xc4   :  { %v176_v6 = vmul.f32 %v174_v4, %v174_v4  ;;  %476 = vmatpush.bf16.msra.mxu3 %v559_v5 }
  0xc6   :  { %v177_v7 = vmul.f32 -0.001358992, %v176_v6  ;;  %v184_v8 = vmul.f32 -0.00019511016, %v176_v6 }
  0xc8   :  { %v178_v10 = vadd.f32 0.041655596, %v177_v7  ;;  %v185_v11 = vadd.f32 0.008332121, %v184_v8 }
  0xca   :  { %v179_v13 = vmul.f32 %v178_v10, %v176_v6  ;;  %v186_v14 = vmul.f32 %v185_v11, %v176_v6 }
  0xcc   :  { %v180_v15 = vadd.f32 -0.4999988, %v179_v13  ;;  %v187_v16 = vadd.f32 -0.16666654, %v186_v14 }
  0xce   :  { %v181_v18 = vmul.f32 %v180_v15, %v176_v6  ;;  %v188_v19 = vmul.f32 %v187_v16, %v176_v6 }
  0xd0   :  { %v182_v21 = vadd.f32 1.0, %v181_v18  ;;  %v189_v20 = vadd.f32 1.0, %v188_v19 }
  0xd2   :  { %v190_v24 = vmul.f32 %v189_v20, %v174_v4  ;;  %v199_v25 = vxor.u32 2147483648, %v182_v21 }
  0xd4   :  { %v196_v27 = vxor.u32 2147483648, %v190_v24  ;;  %v200_v31 = vsel %vm198_vm6, %v199_v25, %v190_v24  ;;  %v354_v33 = vsel %vm352_vm7, %v199_v25, %v190_v24 }
  0xd6   :  { %v197_v30 = vsel %vm195_vm5, %v182_v21, %v196_v27  ;;  %v351_v32 = vsel %vm349_vm3, %v182_v21, %v196_v27 }
  0xd7   :  { %v201_v34 = vsel %vm194_vm4, %v197_v30, %v200_v31  ;;  %v355_v35 = vsel %vm348_vm2, %v351_v32, %v354_v33 }
  0xd8   :  { %v202_v36 = vsel %vm191_vm8, nan, %v201_v34  ;;  %v356_v37 = vsel %vm191_vm8, nan, %v355_v35 }
  0xd9   :  { %v360_v38 = vpack.c.bf16 %v202_v36, %v202_v36  ;;  %v410_v39 = vpack.c.bf16 %v356_v37, %v356_v37 }
  0xdb   :  { %532 = vmatmul.msk.bf16.vlgmr.msra.gmra.mxu0 %vm368_vm9, %v360_v38  ;;  %538 = vmatmul.msk.bf16.vlgmr.msra.gmra.mxu2 %vm368_vm9, %v410_v39 }
 0x158   :  { %v385_v41 = vpop.f32.mrf.mxu0 }
 0x159   :  { %v407_v42 = vadd.f32 %v406_v40, %v385_v41 }
 0x15e   :  { %v433_v44 = vpop.f32.mrf.mxu2 }
 0x15f   :  { %v437_v45 = vadd.f32 %v433_v44, %v407_v42 }
 0x160   :  { %v387_v47 = vpop.f32.mrf.mxu0 }
 0x161   :  { %v442_v46 = vadd.f32 %v572_v43, %v437_v45 }
 0x163   :  { %v443_v48 = vmax.f32 %v442_v46, 0.0 }
 0x165   :  { %v444_v49 = vpack.c.bf16 %v443_v48, %v443_v48 }
 0x166   :  { %v435_v51 = vpop.f32.mrf.mxu2 }
 0x167   :  { %547 = vmatmul.msk.bf16.vlgmr.msra.gmra.mxu3 %vm465_vm10, %v444_v49 }
 0x1ea   :  { %v478_v28 = vpop.f32.mrf.mxu3 }
 0x1eb   :  { %v479_v54 = vadd.f32 %v573_v53, %v478_v28 }
 0x1ed   :  { %v482_v55 = vmax.f32 %v479_v54, 0.0 }
 0x1ef   :  { %v483_v56 = vadd.f32 %v482_v55, %v443_v48 }
 0x1f1   :  { %v484_v57 = vpack.c.bf16 %v483_v56, %v483_v56 }
 0x1f2   :  { %v480_v58 = vpop.f32.mrf.mxu3 }
 0x1f3   :  { %556 = vmatmul.msk.bf16.vlgmr.msrb.gmra.mxu0 %vm465_vm10, %v484_v57 }
 0x270   :  { %v513_v50 = vpop.f32.mrf.mxu0 }
 0x271   :  { %517 = vst.msk [vmem:[%s754_s10] sm:$0xff] %vm389_vm1, %v513_v50 }
 0x278   :  { %v515_v59 = vpop.f32.mrf.mxu0 }

// kernel: tpu_custom_call.1
= control target key start
LH: loop header
LB: loop body
LE: loop exit
PB: predicated region body
PF: predicated region fallthrough
CT: control target
= control target key end

     0   :  { %15 = vsyncpa [#allocation3], 0  ;;  %s472_s0 = inlined_call_operand.vmem [shape: f32[8,4], index: 0, kind: input, shape index: {}]   ;;  %s473_s1 = inlined_call_operand.vmem [shape: f32[8,10], index: 1, kind: input, shape index: {}]   ;;  %s474_s2 = inlined_call_operand.hbm [shape: f32[8,10], index: 2, kind: input, shape index: {}]   ;;  %s475_s3 = inlined_call_operand.hbm [shape: bf16[4,32], index: 3, kind: input, shape index: {}]   ;;  %s476_s4 = inlined_call_operand.hbm [shape: bf16[10,32], index: 4, kind: input, shape index: {}]   ;;  %s477_s5 = inlined_call_operand.vmem [shape: bf16[10,32], index: 5, kind: input, shape index: {}]   ;;  %s478_s6 = inlined_call_operand.vmem [shape: f32[1,32], index: 6, kind: input, shape index: {}]   ;;  %s479_s7 = inlined_call_operand.vmem [shape: bf16[32,32], index: 7, kind: input, shape index: {}]   ;;  %s480_s8 = inlined_call_operand.vmem [shape: f32[1,32], index: 8, kind: input, shape index: {}]   ;;  %s481_s9 = inlined_call_operand.vmem [shape: bf16[32,4], index: 9, kind: input, shape index: {}]   ;;  %s482_s10 = inlined_call_operand.vmem [shape: f32[8,4], index: 10, kind: output, shape index: {}]  }
   0x1   :  { %16 = vsyncpa [#allocation5], 0  ;;  %s37_s15 = sshll.u32 %s475_s3, 4  ;;  %s366_s16 = smov [#allocation4]   ;;  %s38_s15 = int_to_ptr.hbm [resolvable:$true] %s37_s15 }
   0x2   :  { %s39_s17 = sshll.u32 %s366_s16, 4  ;;  %s26_s20 = sshll.u32 %s474_s2, 4  ;;  %s40_s17 = int_to_ptr.vmem [resolvable:$true] %s39_s17  ;;  %s27_s20 = int_to_ptr.hbm [resolvable:$true] %s26_s20 }
   0x3   :  { %42 = dma.hbm_to_vmem [thread:$0]  %s38_s15, 32, %s40_s17, [#allocation5]  }
   0x4   :  { %s367_s21 = smov [#allocation2]   ;;  %s47_s25 = sshll.u32 %s476_s4, 4  ;;  %s48_s25 = int_to_ptr.hbm [resolvable:$true] %s47_s25 }
   0x5   :  { %s28_s22 = sshll.u32 %s367_s21, 4  ;;  %s368_s3 = smov [#allocation6]   ;;  %s29_s22 = int_to_ptr.vmem [resolvable:$true] %s28_s22 }
   0x6   :  { %31 = dma.hbm_to_vmem [thread:$0]  %s27_s20, 128, %s29_s22, [#allocation3]  }
   0x7   :  { %s49_s26 = sshll.u32 %s368_s3, 4  ;;  %s369_s27 = smov 64   ;;  %s50_s26 = int_to_ptr.vmem [resolvable:$true] %s49_s26 }
   0x8   :  { %s370_s28 = smov 4  }
   0x9   :  { %55 = dma.hbm_to_vmem [thread:$0]  %s48_s25, 128, %s50_s26, [#allocation5], %s369_s27, %s369_s27, %s370_s28  }
   0xa   :  { %362 = dma.done.wait [#allocation3], 128  }
   0xb   :  { %363 = vsyncadd [#allocation3], 4294967168 }
   0xc   :  { %364 = dma.done.wait [#allocation5], 160  }
   0xd   :  { %365 = vsyncadd [#allocation5], 4294967136  ;;  %vm117_vm0 = vcmask 1041408   ;;  %vm96_vm1 = vcmask 1044480   ;;  %v83_v0 = vld [vmem:[#allocation4] sm:$0x3] }
   0xe   :  { %v250_v1 = vld [vmem:[#allocation6] sm:$0xf]  ;;  %v277_v2 = vld [vmem:[#allocation6] sm:$0x10]  ;;  %v119_v3 = vsel %vm117_vm0, %v83_v0, 0  ;;  %v81_v7 = vld [vmem:[%s472_s0] sm:$0xff] }
   0xf   :  { %v251_v4 = vor.u32 %v277_v2, %v250_v1  ;;  %v256_v5 = vld [vmem:[%s477_s5] sm:$0xf]  ;;  %v278_v6 = vld [vmem:[%s477_s5] sm:$0x10]  ;;  %128 = vmatpush.bf16.msra.mxu1 %v119_v3  ;;  %v82_v9 = vpack.c.bf16 %v81_v7, %v81_v7  ;;  %vm113_vm2 = vcmask 31744   ;;  %vm92_vm3 = vcmask 80896  }
  0x10   :  { %v257_v8 = vor.u32 %v278_v6, %v256_v5  ;;  %v79_v10 = vld [vmem:[%s473_s1] sm:$0xff]  ;;  %v280_v16 = vld [vmem:[%s479_s7 + $0x8] sm:$0xff]  ;;  %vm189_vm4 = vcmask 261120  }
  0x11   :  { %v80_v11 = vld [vmem:[#allocation2] sm:$0xff]  ;;  %v98_v12 = vsel %vm96_vm1, %v251_v4, 0  ;;  %v84_v13 = vpack.c.bf16 %v79_v10, %v79_v10  ;;  %199 = vmatpush.bf16.msra.mxu3 %v280_v16  ;;  %v282_v18 = vld [vmem:[%s481_s9 + $0x8] sm:$0xff] }
  0x12   :  { %107 = vmatpush.bf16.msra.mxu0 %v98_v12  ;;  %v146_v14 = vsel %vm96_vm1, %v257_v8, 0  ;;  %v134_v15 = vpack.c.bf16 %v80_v11, %v80_v11  ;;  %253 = vmatmul.msk.bf16.vlgmr.msra.gmra.mxu1 %vm113_vm2, %v82_v9  ;;  %v279_v17 = vld [vmem:[%s479_s7] sm:$0xff] }
  0x13   :  { %155 = vmatpush.bf16.msra.mxu2 %v146_v14  ;;  %v288_v23 = vld [vmem:[%s478_s6] ss:$0 sm:$0xff] }
  0x14   :  { %v281_v31 = vld [vmem:[%s481_s9] sm:$0xff] }
  0x15   :  { %252 = vmatmul.msk.bf16.vlgmr.msra.gmra.mxu0 %vm92_vm3, %v84_v13  ;;  %200 = vmatpush.bf16.msra.mxu3 %v279_v17  ;;  %v289_v32 = vld [vmem:[%s480_s8] ss:$0 sm:$0xff] }
  0x16   :  { %258 = vmatmul.msk.bf16.vlgmr.msra.gmra.mxu2 %vm92_vm3, %v134_v15  ;;  %234 = vmatpush.bf16.msrb.mxu0 %v282_v18 }
  0x1a   :  { %235 = vmatpush.bf16.msrb.mxu0 %v281_v31 }
  0x8f   :  { %v130_v19 = vpop.f32.mrf.mxu1 }
  0x92   :  { %v109_v20 = vpop.f32.mrf.mxu0 }
  0x93   :  { %v131_v21 = vadd.f32 %v130_v19, %v109_v20 }
  0x97   :  { %v132_v22 = vpop.f32.mrf.mxu1 }
  0x99   :  { %v157_v24 = vpop.f32.mrf.mxu2 }
  0x9a   :  { %v161_v25 = vadd.f32 %v157_v24, %v131_v21  ;;  %v111_v26 = vpop.f32.mrf.mxu0 }
  0x9c   :  { %v166_v27 = vadd.f32 %v288_v23, %v161_v25 }
  0x9e   :  { %v167_v28 = vmax.f32 %v166_v27, 0.0 }
  0xa0   :  { %v168_v29 = vpack.c.bf16 %v167_v28, %v167_v28 }
  0xa1   :  { %v159_v30 = vpop.f32.mrf.mxu2 }
  0xa2   :  { %267 = vmatmul.msk.bf16.vlgmr.msra.gmra.mxu3 %vm189_vm4, %v168_v29 }
 0x125   :  { %v202_v33 = vpop.f32.mrf.mxu3 }
 0x126   :  { %v203_v34 = vadd.f32 %v289_v32, %v202_v33 }
 0x128   :  { %v206_v35 = vmax.f32 %v203_v34, 0.0 }
 0x12a   :  { %v207_v36 = vadd.f32 %v206_v35, %v167_v28 }
 0x12c   :  { %v208_v37 = vpack.c.bf16 %v207_v36, %v207_v36 }
 0x12d   :  { %v204_v38 = vpop.f32.mrf.mxu3 }
 0x12e   :  { %276 = vmatmul.msk.bf16.vlgmr.msrb.gmra.mxu0 %vm189_vm4, %v208_v37 }
 0x1ab   :  { %v237_v39 = vpop.f32.mrf.mxu0 }
 0x1ac   :  { %241 = vst.msk [vmem:[%s482_s10] sm:$0xff] %vm113_vm2, %v237_v39 }
 0x1b3   :  { %v239_v40 = vpop.f32.mrf.mxu0 }
 0x1b4   :  { %246 = vsyncpa [#allocation3], 1 }
 0x1b5   :  { %247 = vsyncpa [#allocation5], 1 }

</bundles_post_ra>
